<compile_context>
chip_gen: v5e
topology: v5e:2x2
jax: 0.10.0
libtpu: 0.0.40
codegen_flags: <defaults>
</compile_context>

<pallas_src>
import jax
import jax.numpy as jnp
from jax.experimental import pallas as pl
from jax.experimental.pallas import tpu as pltpu


def simple_nn_kernel(x_ref, w1_ref, b1_ref, w2_ref, b2_ref, w3_ref, b3_ref,
                     out_ref):
    # Layer 1: [TB, F] @ [F, 128] + [1, 128] -> ReLU   (f32 accumulation)
    h1 = jnp.dot(x_ref[...], w1_ref[...], preferred_element_type=jnp.float32)
    h1 = jnp.maximum(h1 + b1_ref[...], 0.0)

    # Layer 2: [TB, 128] @ [128, 64] + [1, 64] -> ReLU
    # (intermediates carried in f32; cast only at the MXU input)
    h2 = jnp.dot(h1.astype(w2_ref.dtype), w2_ref[...],
                 preferred_element_type=jnp.float32)
    h2 = jnp.maximum(h2 + b2_ref[...], 0.0)

    # Layer 3: [TB, 64] @ [64, out] + [1, out]
    h3 = jnp.dot(h2.astype(w3_ref.dtype), w3_ref[...],
                 preferred_element_type=jnp.float32)
    out_ref[...] = (h3 + b3_ref[...]).astype(out_ref.dtype)


def _round_up(x, m):
    return ((x + m - 1) // m) * m


def _choose_tb(batch, feat, out_size, x_itemsize, sublane, max_tb):
    # Budget the double-buffered streaming tiles (x in, out back) against a
    # conservative ~16 MiB so the kernel also fits v7x's smaller scoped VMEM.
    budget = 16 * 1024 * 1024
    per_row = 2 * (feat * x_itemsize + out_size * 4)
    tb = budget // max(per_row, 1)
    tb = min(int(tb), int(max_tb), _round_up(batch, sublane))
    tb = max((tb // sublane) * sublane, sublane)
    return tb


def simple_nn_forward(x, params, *, compute_dtype=jnp.bfloat16, max_tb=512):
    """x: [B, input_size] float32. params: dict of (w1,b1,w2,b2,w3,b3) in f32.

    Matmuls run in `compute_dtype` on the MXU with f32 accumulation; returned
    output is float32 — same forward semantics as the PyTorch SimpleNN.
    """
    w1, b1, w2, b2, w3, b3 = (params["w1"], params["b1"], params["w2"],
                              params["b2"], params["w3"], params["b3"])
    B, F = x.shape
    H1, H2 = w1.shape[1], w2.shape[1]
    out_size = w3.shape[1]

    xc = x.astype(compute_dtype)
    w1c = w1.astype(compute_dtype)
    w2c = w2.astype(compute_dtype)
    w3c = w3.astype(compute_dtype)
    b1f = b1.astype(jnp.float32)
    b2f = b2.astype(jnp.float32)
    b3f = b3.astype(jnp.float32)

    itemsize = jnp.dtype(compute_dtype).itemsize
    sublane = 8 if itemsize >= 4 else 16
    tb = _choose_tb(B, F, out_size, itemsize, sublane, max_tb)
    b_pad = _round_up(B, tb)
    if b_pad != B:
        xc = jnp.pad(xc, ((0, b_pad - B), (0, 0)))
    grid = (b_pad // tb,)

    # Weights & biases: full-extent blocks with constant index maps -> loaded
    # once, VMEM-resident across every batch tile.
    def const(a):
        return pl.BlockSpec(a.shape, lambda i: (0,) * a.ndim)

    weight_bytes = ((F * H1 + H1 * H2 + H2 * out_size) * itemsize
                    + (H1 + H2 + out_size) * 4)
    stream_bytes = 2 * tb * (F * itemsize + out_size * 4)  # double-buffered
    vmem_limit = min(max(weight_bytes + stream_bytes + (2 << 20),
                         32 * 1024 * 1024), 128 * 1024 * 1024)
    # TODO(synk): for very large file-driven input_size (F ~> 60k), tile w1/x
    # along F with an "arbitrary" K grid axis + f32 scratch accumulator
    # instead of relying on a raised vmem_limit_bytes.

    flops = 2 * b_pad * (F * H1 + H1 * H2 + H2 * out_size)
    bytes_accessed = int(b_pad * F * itemsize + weight_bytes
                         + b_pad * out_size * 4)

    out_pad = pl.pallas_call(
        simple_nn_kernel,
        out_shape=jax.ShapeDtypeStruct((b_pad, out_size), jnp.float32),
        grid_spec=pltpu.PrefetchScalarGridSpec(
            num_scalar_prefetch=0,
            grid=grid,
            in_specs=[pl.BlockSpec((tb, F), lambda i: (i, 0)),
                      const(w1c), const(b1f),
                      const(w2c), const(b2f),
                      const(w3c), const(b3f)],
            # Output last dim kept full-extent (lane-sparse store is minor at
            # tiny out_size); if output_size grows, keep it a 128-multiple and
            # never split it below 128 lanes.
            out_specs=pl.BlockSpec((tb, out_size), lambda i: (i, 0)),
        ),
        compiler_params=pltpu.CompilerParams(
            dimension_semantics=("parallel",),
            vmem_limit_bytes=int(vmem_limit)),
        cost_estimate=pl.CostEstimate(flops=int(flops), transcendentals=0,
                                      bytes_accessed=bytes_accessed),
    )(xc, w1c, b1f, w2c, b2f, w3c, b3f)

    return out_pad[:B]


def init_params(key, input_size, output_size):
    """Deterministic init mimicking nn.Linear (uniform +/- 1/sqrt(fan_in))."""
    dims = [(input_size, 128), (128, 64), (64, output_size)]
    params = {}
    for i, (fan_in, fan_out) in enumerate(dims, start=1):
        key, kw, kb = jax.random.split(key, 3)
        bound = 1.0 / jnp.sqrt(fan_in)
        params[f"w{i}"] = jax.random.uniform(
            kw, (fan_in, fan_out), jnp.float32, -bound, bound)
        params[f"b{i}"] = jax.random.uniform(
            kb, (1, fan_out), jnp.float32, -bound, bound)
    return params


def reference_forward(x, p):
    h = jnp.maximum(x @ p["w1"] + p["b1"], 0.0)
    h = jnp.maximum(h @ p["w2"] + p["b2"], 0.0)
    return h @ p["w3"] + p["b3"]


if __name__ == "__main__":
    key = jax.random.PRNGKey(0)

    # Case 1: tiny shapes, f32 compute -> tight match vs reference.
    B1, F1, O1 = 8, 32, 8
    key, kx1, kp1 = jax.random.split(key, 3)
    x1 = jax.random.normal(kx1, (B1, F1), dtype=jnp.float32)
    p1 = init_params(kp1, F1, O1)
    out1 = jax.block_until_ready(
        simple_nn_forward(x1, p1, compute_dtype=jnp.float32))
    ref1 = reference_forward(x1, p1)
    assert out1.shape == (B1, O1)
    assert jnp.allclose(out1, ref1, atol=1e-5, rtol=1e-5)

    # Case 2: non-multiple batch -> exercises padding + multi-tile grid, f32.
    B2, F2, O2 = 300, 96, 8
    key, kx2, kp2 = jax.random.split(key, 3)
    x2 = jax.random.normal(kx2, (B2, F2), dtype=jnp.float32)
    p2 = init_params(kp2, F2, O2)
    out2 = jax.block_until_ready(
        simple_nn_forward(x2, p2, compute_dtype=jnp.float32, max_tb=128))
    ref2 = reference_forward(x2, p2)
    assert out2.shape == (B2, O2)
    assert jnp.allclose(out2, ref2, atol=1e-4, rtol=1e-4)

    # Case 3: same problem with bf16 inputs/weights (f32 accumulation).
    out3 = jax.block_until_ready(
        simple_nn_forward(x2, p2, compute_dtype=jnp.bfloat16, max_tb=128))
    assert out3.shape == (B2, O2)
    assert jnp.allclose(out3, ref2, atol=5e-2, rtol=5e-2)

    print("KERNEL_OK")
</pallas_src>

<mosaic_0001>
module attributes {stable_mosaic.version = 11 : i64} {
  func.func @simple_nn_kernel(%arg0: i32, %arg1: memref<8x32xf32, #tpu.memory_space<vmem>>, %arg2: memref<32x128xf32, #tpu.memory_space<vmem>>, %arg3: memref<1x128xf32, #tpu.memory_space<vmem>>, %arg4: memref<128x64xf32, #tpu.memory_space<vmem>>, %arg5: memref<1x64xf32, #tpu.memory_space<vmem>>, %arg6: memref<64x8xf32, #tpu.memory_space<vmem>>, %arg7: memref<1x8xf32, #tpu.memory_space<vmem>>, %arg8: memref<8x8xf32, #tpu.memory_space<vmem>>) attributes {dimension_semantics = [#tpu.dimension_semantics<parallel>], iteration_bounds = array<i64: 1>, scalar_prefetch = 0 : i64, scratch_operands = 0 : i64, tpu.core_type = #tpu.core_type<tc>, window_params = [{transform_indices = @transform_0, window_bounds = array<i64: 8, 32>}, {pipeline_mode = #tpu.pipeline_mode<synchronous>, transform_indices = @transform_1, window_bounds = array<i64: 32, 128>}, {pipeline_mode = #tpu.pipeline_mode<synchronous>, transform_indices = @transform_2, window_bounds = array<i64: 1, 128>}, {pipeline_mode = #tpu.pipeline_mode<synchronous>, transform_indices = @transform_3, window_bounds = array<i64: 128, 64>}, {pipeline_mode = #tpu.pipeline_mode<synchronous>, transform_indices = @transform_4, window_bounds = array<i64: 1, 64>}, {pipeline_mode = #tpu.pipeline_mode<synchronous>, transform_indices = @transform_5, window_bounds = array<i64: 64, 8>}, {pipeline_mode = #tpu.pipeline_mode<synchronous>, transform_indices = @transform_6, window_bounds = array<i64: 1, 8>}, {transform_indices = @transform_7, window_bounds = array<i64: 8, 8>}]} {
    %c0 = arith.constant 0 : index
    %c0_0 = arith.constant 0 : index
    %0 = vector.load %arg1[%c0, %c0_0] : memref<8x32xf32, #tpu.memory_space<vmem>>, vector<8x32xf32>
    %c0_1 = arith.constant 0 : index
    %c0_2 = arith.constant 0 : index
    %1 = vector.load %arg2[%c0_1, %c0_2] : memref<32x128xf32, #tpu.memory_space<vmem>>, vector<32x128xf32>
    %cst = arith.constant dense<0.000000e+00> : vector<8x128xf32>
    %2 = tpu.matmul %0, %1, %cst {dimension_numbers = #tpu.dot_dimension_numbers<[1], [0], [0], [1], [0, 0, 1, 1], [], []>} : vector<8x32xf32>, vector<32x128xf32>, vector<8x128xf32> -> vector<8x128xf32>
    %c0_3 = arith.constant 0 : index
    %c0_4 = arith.constant 0 : index
    %3 = vector.load %arg3[%c0_3, %c0_4] : memref<1x128xf32, #tpu.memory_space<vmem>>, vector<1x128xf32>
    %4 = vector.broadcast %3 : vector<1x128xf32> to vector<8x128xf32>
    %5 = arith.addf %2, %4 : vector<8x128xf32>
    %cst_5 = arith.constant 0.000000e+00 : f32
    %6 = vector.broadcast %cst_5 : f32 to vector<8x128xf32>
    %7 = arith.maximumf %5, %6 : vector<8x128xf32>
    %c0_6 = arith.constant 0 : index
    %c0_7 = arith.constant 0 : index
    %8 = vector.load %arg4[%c0_6, %c0_7] : memref<128x64xf32, #tpu.memory_space<vmem>>, vector<128x64xf32>
    %cst_8 = arith.constant dense<0.000000e+00> : vector<8x64xf32>
    %9 = tpu.matmul %7, %8, %cst_8 {dimension_numbers = #tpu.dot_dimension_numbers<[1], [0], [0], [1], [0, 0, 1, 1], [], []>} : vector<8x128xf32>, vector<128x64xf32>, vector<8x64xf32> -> vector<8x64xf32>
    %c0_9 = arith.constant 0 : index
    %c0_10 = arith.constant 0 : index
    %10 = vector.load %arg5[%c0_9, %c0_10] : memref<1x64xf32, #tpu.memory_space<vmem>>, vector<1x64xf32>
    %11 = vector.broadcast %10 : vector<1x64xf32> to vector<8x64xf32>
    %12 = arith.addf %9, %11 : vector<8x64xf32>
    %cst_11 = arith.constant 0.000000e+00 : f32
    %13 = vector.broadcast %cst_11 : f32 to vector<8x64xf32>
    %14 = arith.maximumf %12, %13 : vector<8x64xf32>
    %c0_12 = arith.constant 0 : index
    %c0_13 = arith.constant 0 : index
    %15 = vector.load %arg6[%c0_12, %c0_13] : memref<64x8xf32, #tpu.memory_space<vmem>>, vector<64x8xf32>
    %cst_14 = arith.constant dense<0.000000e+00> : vector<8x8xf32>
    %16 = tpu.matmul %14, %15, %cst_14 {dimension_numbers = #tpu.dot_dimension_numbers<[1], [0], [0], [1], [0, 0, 1, 1], [], []>} : vector<8x64xf32>, vector<64x8xf32>, vector<8x8xf32> -> vector<8x8xf32>
    %c0_15 = arith.constant 0 : index
    %c0_16 = arith.constant 0 : index
    %17 = vector.load %arg7[%c0_15, %c0_16] : memref<1x8xf32, #tpu.memory_space<vmem>>, vector<1x8xf32>
    %18 = vector.broadcast %17 : vector<1x8xf32> to vector<8x8xf32>
    %19 = arith.addf %16, %18 : vector<8x8xf32>
    %c0_17 = arith.constant 0 : index
    %c0_18 = arith.constant 0 : index
    %20 = vector.load %arg8[%c0_17, %c0_18] : memref<8x8xf32, #tpu.memory_space<vmem>>, vector<8x8xf32>
    tpu.vector_store %arg8[%c0_17, %c0_18], %19 {strides = array<i32>} : memref<8x8xf32, #tpu.memory_space<vmem>>, vector<8x8xf32>,
    return
  }
  func.func @transform_0(%arg0: i32) -> (i32, i32) {
    %c0_i32 = arith.constant 0 : i32
    %c0_i32_0 = arith.constant 0 : i32
    return %arg0, %c0_i32 : i32, i32
  }
  func.func @transform_1(%arg0: i32) -> (i32, i32) {
    %c0_i32 = arith.constant 0 : i32
    %c0_i32_0 = arith.constant 0 : i32
    %c0_i32_1 = arith.constant 0 : i32
    return %c0_i32, %c0_i32_0 : i32, i32
  }
  func.func @transform_2(%arg0: i32) -> (i32, i32) {
    %c0_i32 = arith.constant 0 : i32
    %c0_i32_0 = arith.constant 0 : i32
    %c0_i32_1 = arith.constant 0 : i32
    return %c0_i32, %c0_i32_0 : i32, i32
  }
  func.func @transform_3(%arg0: i32) -> (i32, i32) {
    %c0_i32 = arith.constant 0 : i32
    %c0_i32_0 = arith.constant 0 : i32
    %c0_i32_1 = arith.constant 0 : i32
    return %c0_i32, %c0_i32_0 : i32, i32
  }
  func.func @transform_4(%arg0: i32) -> (i32, i32) {
    %c0_i32 = arith.constant 0 : i32
    %c0_i32_0 = arith.constant 0 : i32
    %c0_i32_1 = arith.constant 0 : i32
    return %c0_i32, %c0_i32_0 : i32, i32
  }
  func.func @transform_5(%arg0: i32) -> (i32, i32) {
    %c0_i32 = arith.constant 0 : i32
    %c0_i32_0 = arith.constant 0 : i32
    %c0_i32_1 = arith.constant 0 : i32
    return %c0_i32, %c0_i32_0 : i32, i32
  }
  func.func @transform_6(%arg0: i32) -> (i32, i32) {
    %c0_i32 = arith.constant 0 : i32
    %c0_i32_0 = arith.constant 0 : i32
    %c0_i32_1 = arith.constant 0 : i32
    return %c0_i32, %c0_i32_0 : i32, i32
  }
  func.func @transform_7(%arg0: i32) -> (i32, i32) {
    %c0_i32 = arith.constant 0 : i32
    %c0_i32_0 = arith.constant 0 : i32
    return %arg0, %c0_i32 : i32, i32
  }
}

</mosaic_0001>

<bundles_post_ra>
// kernel: tpu_custom_call.1
= control target key start
LH: loop header
LB: loop body
LE: loop exit
PB: predicated region body
PF: predicated region fallthrough
CT: control target
= control target key end

     0   :  { %vm36_vm0 = vcmask 261120   ;;  %s328_s0 = inlined_call_operand.vmem [shape: f32[8,32], index: 0, kind: input, shape index: {}]   ;;  %s329_s1 = inlined_call_operand.vmem [shape: f32[32,128], index: 1, kind: input, shape index: {}]   ;;  %s330_s2 = inlined_call_operand.vmem [shape: f32[1,128], index: 2, kind: input, shape index: {}]   ;;  %s331_s3 = inlined_call_operand.vmem [shape: f32[128,64], index: 3, kind: input, shape index: {}]   ;;  %s332_s4 = inlined_call_operand.vmem [shape: f32[1,64], index: 4, kind: input, shape index: {}]   ;;  %s333_s5 = inlined_call_operand.vmem [shape: f32[64,8], index: 5, kind: input, shape index: {}]   ;;  %s334_s6 = inlined_call_operand.vmem [shape: f32[1,8], index: 6, kind: input, shape index: {}]   ;;  %s335_s7 = inlined_call_operand.hbm [shape: f32[8,8], index: 7, kind: output, shape index: {}]  }
   0x1   :  { %v31_v0 = vld [vmem:[%s329_s1 + $0x18] sm:$0xff]  ;;  %v30_v1 = vld [vmem:[%s329_s1 + $0x10] sm:$0xff]  ;;  %v29_v3 = vld [vmem:[%s329_s1 + $0x8] sm:$0xff] }
   0x2   :  { %52 = vmatpush.msra.mxu0 %v31_v0  ;;  %v76_v2 = vld [vmem:[%s331_s3 + $0x78] sm:$0xff]  ;;  %v75_v4 = vld [vmem:[%s331_s3 + $0x70] sm:$0xff]  ;;  %v74_v5 = vld [vmem:[%s331_s3 + $0x68] sm:$0xff] }
   0x3   :  { %81 = vmatpush.msra.mxu1 %v76_v2  ;;  %v28_v6 = vld [vmem:[%s329_s1] sm:$0xff]  ;;  %v72_v9 = vld [vmem:[%s331_s3 + $0x58] sm:$0xff] }
   0x4   :  { %53 = vmatpush.msra.mxu0 %v30_v1  ;;  %v27_v7 = vld [vmem:[%s328_s0] sm:$0xff] }
   0x5   :  { %82 = vmatpush.msra.mxu1 %v75_v4  ;;  %v73_v8 = vld [vmem:[%s331_s3 + $0x60] sm:$0xff] }
   0x6   :  { %54 = vmatpush.msra.mxu0 %v29_v3 }
   0x7   :  { %83 = vmatpush.msra.mxu1 %v74_v5 }
   0x8   :  { %55 = vmatpush.msra.mxu0 %v28_v6 }
   0x9   :  { %12 = vsyncpa [#allocation3], 0  ;;  %156 = vmatmul.msk.f32.vlgmr.msra.gmra.mxu0 %vm36_vm0, %v27_v7  ;;  %84 = vmatpush.msra.mxu1 %v73_v8  ;;  %v71_v10 = vld [vmem:[%s331_s3 + $0x50] sm:$0xff]  ;;  %v70_v11 = vld [vmem:[%s331_s3 + $0x48] sm:$0xff]  ;;  %vm114_vm1 = vcmask 523264   ;;  %s188_s13 = smov [#allocation2]  }
   0xa   :  { %v69_v12 = vld [vmem:[%s331_s3 + $0x40] sm:$0xff]  ;;  %v68_v13 = vld [vmem:[%s331_s3 + $0x38] sm:$0xff]  ;;  %v67_v14 = vld [vmem:[%s331_s3 + $0x30] sm:$0xff]  ;;  %s145_s14 = sshll.u32 %s188_s13, 4  ;;  %vm138_vm2 = vcmask 64512   ;;  %s146_s14 = int_to_ptr.vmem [resolvable:$true] %s145_s14 }
   0xb   :  { %85 = vmatpush.msra.mxu1 %v72_v9  ;;  %v66_v15 = vld [vmem:[%s331_s3 + $0x28] sm:$0xff]  ;;  %v65_v16 = vld [vmem:[%s331_s3 + $0x20] sm:$0xff]  ;;  %v64_v17 = vld [vmem:[%s331_s3 + $0x18] sm:$0xff] }
   0xc   :  { %v63_v18 = vld [vmem:[%s331_s3 + $0x10] sm:$0xff]  ;;  %v62_v19 = vld [vmem:[%s331_s3 + $0x8] sm:$0xff]  ;;  %v61_v20 = vld [vmem:[%s331_s3] sm:$0xff] }
   0xd   :  { %86 = vmatpush.msra.mxu1 %v71_v10  ;;  %v109_v21 = vld [vmem:[%s333_s5 + $0x38] sm:$0xff]  ;;  %v108_v22 = vld [vmem:[%s333_s5 + $0x30] sm:$0xff]  ;;  %v107_v23 = vld [vmem:[%s333_s5 + $0x28] sm:$0xff] }
   0xe   :  { %126 = vmatpush.msra.mxu2 %v109_v21  ;;  %v106_v24 = vld [vmem:[%s333_s5 + $0x20] sm:$0xff]  ;;  %v105_v25 = vld [vmem:[%s333_s5 + $0x18] sm:$0xff]  ;;  %v104_v30 = vld [vmem:[%s333_s5 + $0x10] sm:$0xff] }
   0xf   :  { %87 = vmatpush.msra.mxu1 %v70_v11  ;;  %v159_v26 = vld [vmem:[%s330_s2] ss:$0 sm:$0xff]  ;;  %v103_v31 = vld [vmem:[%s333_s5 + $0x8] sm:$0xff] }
  0x10   :  { %127 = vmatpush.msra.mxu2 %v108_v22  ;;  %v102_v32 = vld [vmem:[%s333_s5] sm:$0xff]  ;;  %s147_s5 = sshll.u32 %s335_s7, 4  ;;  %s148_s5 = int_to_ptr.hbm [resolvable:$true] %s147_s5 }
  0x11   :  { %88 = vmatpush.msra.mxu1 %v69_v12  ;;  %v160_v33 = vld [vmem:[%s332_s4] ss:$0 sm:$0xff] }
  0x12   :  { %128 = vmatpush.msra.mxu2 %v107_v23  ;;  %v161_v37 = vld [vmem:[%s334_s6] ss:$0 sm:$0xff] }
  0x13   :  { %89 = vmatpush.msra.mxu1 %v68_v13 }
  0x14   :  { %129 = vmatpush.msra.mxu2 %v106_v24 }
  0x15   :  { %90 = vmatpush.msra.mxu1 %v67_v14 }
  0x16   :  { %130 = vmatpush.msra.mxu2 %v105_v25 }
  0x17   :  { %91 = vmatpush.msra.mxu1 %v66_v15 }
  0x18   :  { %131 = vmatpush.msra.mxu2 %v104_v30 }
  0x19   :  { %92 = vmatpush.msra.mxu1 %v65_v16 }
  0x1a   :  { %132 = vmatpush.msra.mxu2 %v103_v31 }
  0x1b   :  { %93 = vmatpush.msra.mxu1 %v64_v17 }
  0x1c   :  { %133 = vmatpush.msra.mxu2 %v102_v32 }
  0x1d   :  { %94 = vmatpush.msra.mxu1 %v63_v18 }
  0x1f   :  { %95 = vmatpush.msra.mxu1 %v62_v19 }
  0x21   :  { %96 = vmatpush.msra.mxu1 %v61_v20 }
  0x86   :  { %v57_v27 = vpop.f32.mrf.mxu0 }
  0x87   :  { %v58_v28 = vadd.f32 %v159_v26, %v57_v27 }
  0x89   :  { %v60_v29 = vmax.f32 %v58_v28, 0.0 }
  0x8b   :  { %97 = vmatmul.f32.vlgmr.msra.gmra.mxu1 %v60_v29 }
 0x108   :  { %v98_v34 = vpop.f32.mrf.mxu1 }
 0x109   :  { %v99_v35 = vadd.f32 %v160_v33, %v98_v34 }
 0x10b   :  { %v101_v36 = vmax.f32 %v99_v35, 0.0 }
 0x10d   :  { %157 = vmatmul.msk.f32.vlgmr.msra.gmra.mxu2 %vm114_vm1, %v101_v36 }
 0x190   :  { %v135_v38 = vpop.f32.mrf.mxu2 }
 0x191   :  { %v136_v39 = vadd.f32 %v161_v37, %v135_v38 }
 0x193   :  { %139 = vst.msk [vmem:[#allocation2] sm:$0xff] %vm138_vm2, %v136_v39 }
 0x194   :  { %150 = dma.vmem_to_hbm [thread:$0]  %s146_s14, 128, %s148_s5, [#allocation3]  }
 0x195   :  { %186 = dma.done.wait [#allocation3], 128  }
 0x196   :  { %187 = vsyncadd [#allocation3], 4294967168 }
 0x197   :  { %155 = vsyncpa [#allocation3], 1 }

</bundles_post_ra>
